<compile_context>
chip_gen: v7x
topology: tpu7x:2x2x1
jax: 0.10.0
libtpu: 0.0.40
codegen_flags: <defaults>
</compile_context>

<pallas_src>
import functools

import jax
import jax.numpy as jnp
from jax import lax
from jax.experimental import pallas as pl
from jax.experimental.pallas import tpu as pltpu

MAX_LOG_STD = 2.0
MIN_LOG_STD = -20.0

_TILE_M_MAX = 2048        # max batch-tile rows (multiple of 8); ~2.3 MB VMEM at f32 out
_MIN_SPLIT_BATCH = 256    # force >=2 grid steps at/above this batch (v7x megacore)


def _cdiv(a, b):
    return (a + b - 1) // b


def _round_up(x, m):
    return ((x + m - 1) // m) * m


def _choose_tiling(batch):
    """Balanced tiles: minimal padding, >=2 parallel steps when there is enough work."""
    num_tiles = _cdiv(batch, _TILE_M_MAX)
    if batch >= _MIN_SPLIT_BATCH:
        num_tiles = max(num_tiles, 2)          # let v7x's 2nd TensorCore take half
    tile_m = _round_up(_cdiv(batch, num_tiles), 8)
    grid = _cdiv(batch, tile_m)
    return tile_m, grid


def _actor_kernel(x_ref, w1_ref, b1_ref, wh1_ref, bh1_ref, wh2_ref, bh2_ref,
                  out_ref, *, n_actions):
    # feature = ReLU(Linear(input_dims -> H));  bf16 MXU operands, f32 accumulate
    x = x_ref[...].astype(jnp.bfloat16)
    feat = jnp.dot(x, w1_ref[...], preferred_element_type=jnp.float32) + b1_ref[...]
    feat = jnp.maximum(feat, 0.0)

    # fused head layer-1: [mean_hidden | log_std_hidden] in one (tile_m, 2H) matmul
    h = jnp.dot(feat.astype(jnp.bfloat16), wh1_ref[...],
                preferred_element_type=jnp.float32) + bh1_ref[...]
    h = jnp.maximum(h, 0.0)

    # fused head layer-2: block-diagonal weight -> lane-dense (tile_m, P) result:
    #   columns [0, A) = mu, [A, 2A) = log_std, [2A, P) = zero padding
    heads = jnp.dot(h.astype(jnp.bfloat16), wh2_ref[...],
                    preferred_element_type=jnp.float32) + bh2_ref[...]

    lane = lax.broadcasted_iota(jnp.int32, heads.shape, 1)
    is_std = (lane >= n_actions) & (lane < 2 * n_actions)
    std = jnp.exp(jnp.clip(heads, MIN_LOG_STD, MAX_LOG_STD))  # EUP; discarded on mu lanes
    out_ref[...] = jnp.where(is_std, std, heads).astype(out_ref.dtype)


def prepare_params(params):
    """One-time preprocessing of PyTorch-layout params (weight (out,in), bias (out,))
    into the fused kernel layout. Call ONCE at parameter-load time, not per forward."""
    f32 = lambda a: jnp.asarray(a, jnp.float32)
    w1, b1 = f32(params["w1"]), f32(params["b1"])
    wm1, bm1 = f32(params["wm1"]), f32(params["bm1"])
    wm2, bm2 = f32(params["wm2"]), f32(params["bm2"])
    ws1, bs1 = f32(params["ws1"]), f32(params["bs1"])
    ws2, bs2 = f32(params["ws2"]), f32(params["bs2"])

    hidden = wm1.shape[0]
    n_actions = wm2.shape[0]
    out_pad = max(128, _round_up(2 * n_actions, 128))  # lane-dense output width

    wh2 = jnp.zeros((2 * hidden, out_pad), jnp.float32)
    wh2 = wh2.at[:hidden, :n_actions].set(wm2.T)
    wh2 = wh2.at[hidden:, n_actions:2 * n_actions].set(ws2.T)

    bh2 = jnp.zeros((1, out_pad), jnp.float32)
    bh2 = bh2.at[0, :n_actions].set(bm2)
    bh2 = bh2.at[0, n_actions:2 * n_actions].set(bs2)

    kp = {
        # matmul operands stored bf16 (native MXU dtype); biases stay f32
        "w1": w1.T.astype(jnp.bfloat16),                                       # (in, H)
        "b1": b1[None, :],                                                     # (1, H)
        "wh1": jnp.concatenate([wm1.T, ws1.T], axis=1).astype(jnp.bfloat16),   # (H, 2H)
        "bh1": jnp.concatenate([bm1, bs1])[None, :],                           # (1, 2H)
        "wh2": wh2.astype(jnp.bfloat16),                                       # (2H, P)
        "bh2": bh2,                                                            # (1, P)
    }
    return kp, n_actions


def _vmem_limit_bytes(kp, tile_m, in_dims, out_pad):
    weight_bytes = sum(int(v.size) * v.dtype.itemsize for v in kp.values())
    io_bytes = 2 * tile_m * in_dims * 4 + 2 * tile_m * out_pad * 4  # double-buffered in/out
    total = 2 * (weight_bytes + io_bytes)                           # 2x headroom
    return int(min(max(total, 8 * 1024 * 1024), 32 * 1024 * 1024))


@functools.partial(jax.jit, static_argnames=("n_actions",))
def actor_forward(state, kp, *, n_actions):
    """Returns (mu, std) — the parameters of the Normal distribution."""
    state = state.astype(jnp.float32)
    batch, in_dims = state.shape
    hidden = kp["w1"].shape[1]
    out_pad = kp["wh2"].shape[1]

    tile_m, grid_m = _choose_tiling(batch)
    rows = grid_m * tile_m   # >= batch; last block may be partial (padding never read back)

    def resident(shape):  # whole-array block, never re-fetched -> single buffer
        return pl.BlockSpec(shape, lambda i: (0, 0), pipeline_mode=pl.Buffered(1))

    cost = pl.CostEstimate(
        flops=2 * rows * (in_dims * hidden + 2 * hidden * hidden
                          + 2 * hidden * out_pad),
        transcendentals=rows * out_pad,
        bytes_accessed=4 * (batch * in_dims + batch * out_pad)
                       + sum(int(v.size) * v.dtype.itemsize for v in kp.values()),
    )

    out = pl.pallas_call(
        functools.partial(_actor_kernel, n_actions=n_actions),
        out_shape=jax.ShapeDtypeStruct((batch, out_pad), jnp.float32),
        grid=(grid_m,),
        in_specs=[
            pl.BlockSpec((tile_m, in_dims), lambda i: (i, 0)),  # state: batch-tiled
            resident(kp["w1"].shape), resident(kp["b1"].shape),
            resident(kp["wh1"].shape), resident(kp["bh1"].shape),
            resident(kp["wh2"].shape), resident(kp["bh2"].shape),
        ],
        out_specs=pl.BlockSpec((tile_m, out_pad), lambda i: (i, 0)),
        compiler_params=pltpu.CompilerParams(
            dimension_semantics=("parallel",),
            vmem_limit_bytes=_vmem_limit_bytes(kp, tile_m, in_dims, out_pad),
        ),
        cost_estimate=cost,
    )(state, kp["w1"], kp["b1"], kp["wh1"], kp["bh1"], kp["wh2"], kp["bh2"])

    mu = out[:, :n_actions]
    std = out[:, n_actions:2 * n_actions]
    return mu, std


def init_params(key, input_dims, hidden, n_actions):
    """Deterministic synthetic init (PyTorch Linear layout: weight (out, in), bias (out,))."""
    keys = jax.random.split(key, 10)

    def linear(kw, kb, fan_in, fan_out):
        bound = 1.0 / jnp.sqrt(fan_in)
        w = jax.random.uniform(kw, (fan_out, fan_in), jnp.float32, -bound, bound)
        b = jax.random.uniform(kb, (fan_out,), jnp.float32, -bound, bound)
        return w, b

    w1, b1 = linear(keys[0], keys[1], input_dims, hidden)
    wm1, bm1 = linear(keys[2], keys[3], hidden, hidden)
    wm2, bm2 = linear(keys[4], keys[5], hidden, n_actions)
    ws1, bs1 = linear(keys[6], keys[7], hidden, hidden)
    ws2, bs2 = linear(keys[8], keys[9], hidden, n_actions)
    return dict(w1=w1, b1=b1, wm1=wm1, bm1=bm1, wm2=wm2, bm2=bm2,
                ws1=ws1, bs1=bs1, ws2=ws2, bs2=bs2)


def reference_forward(state, params):
    """Plain-JAX f32 reference of the PyTorch forward (for sanity check)."""
    feat = jnp.maximum(state @ params["w1"].T + params["b1"], 0.0)
    mh = jnp.maximum(feat @ params["wm1"].T + params["bm1"], 0.0)
    mu = mh @ params["wm2"].T + params["bm2"]
    sh = jnp.maximum(feat @ params["ws1"].T + params["bs1"], 0.0)
    log_std = sh @ params["ws2"].T + params["bs2"]
    log_std = jnp.clip(log_std, MIN_LOG_STD, MAX_LOG_STD)
    return mu, jnp.exp(log_std)


if __name__ == "__main__":
    # TODO(synk): Adam optimizer and checkpoint save/load are host-side objects with no
    # kernel equivalent; the kernel implements forward() and returns (mu, std).
    key = jax.random.PRNGKey(0)
    k_state, k_params, k_state2 = jax.random.split(key, 3)

    batch = 8
    input_dims = 16
    hidden = 32       # small stand-in for the module's default hidden_size=256
    n_actions = 4

    params = init_params(k_params, input_dims, hidden, n_actions)
    kparams, n_act = prepare_params(params)   # one-time preprocessing (outside jit)

    # bf16 matmul operands -> loosen tolerances vs the f32 reference
    ATOL = 2e-2
    RTOL = 2e-2

    # --- small batch (single grid step) ---
    state = jax.random.normal(k_state, (batch, input_dims), jnp.float32)
    mu, std = actor_forward(state, kparams, n_actions=n_act)
    jax.block_until_ready((mu, std))

    mu_ref, std_ref = reference_forward(state, params)
    assert mu.shape == (batch, n_actions) and std.shape == (batch, n_actions)
    assert jnp.allclose(mu, mu_ref, atol=ATOL, rtol=RTOL)
    assert jnp.allclose(std, std_ref, atol=ATOL, rtol=RTOL)
    assert bool(jnp.all(std > 0))

    # --- larger batch (exercises balanced tiling, grid=2, partial last block) ---
    big_batch = 600
    state_big = jax.random.normal(k_state2, (big_batch, input_dims), jnp.float32)
    mu_b, std_b = actor_forward(state_big, kparams, n_actions=n_act)
    jax.block_until_ready((mu_b, std_b))

    mu_bref, std_bref = reference_forward(state_big, params)
    assert mu_b.shape == (big_batch, n_actions) and std_b.shape == (big_batch, n_actions)
    assert jnp.allclose(mu_b, mu_bref, atol=ATOL, rtol=RTOL)
    assert jnp.allclose(std_b, std_bref, atol=ATOL, rtol=RTOL)
    assert bool(jnp.all(std_b > 0))

    print("KERNEL_OK")
</pallas_src>

<mosaic_0001>
module attributes {stable_mosaic.version = 11 : i64} {
  func.func @_actor_kernel(%arg0: i32, %arg1: memref<8x16xf32, #tpu.memory_space<vmem>>, %arg2: memref<16x32xbf16, #tpu.memory_space<vmem>>, %arg3: memref<1x32xf32, #tpu.memory_space<vmem>>, %arg4: memref<32x64xbf16, #tpu.memory_space<vmem>>, %arg5: memref<1x64xf32, #tpu.memory_space<vmem>>, %arg6: memref<64x128xbf16, #tpu.memory_space<vmem>>, %arg7: memref<1x128xf32, #tpu.memory_space<vmem>>, %arg8: memref<8x128xf32, #tpu.memory_space<vmem>>) attributes {dimension_semantics = [#tpu.dimension_semantics<parallel>], iteration_bounds = array<i64: 1>, scalar_prefetch = 0 : i64, scratch_operands = 0 : i64, tpu.core_type = #tpu.core_type<tc>, window_params = [{transform_indices = @transform_0, window_bounds = array<i64: 8, 16>}, {pipeline_mode = #tpu.pipeline_mode<synchronous>, transform_indices = @transform_1, window_bounds = array<i64: 16, 32>}, {pipeline_mode = #tpu.pipeline_mode<synchronous>, transform_indices = @transform_2, window_bounds = array<i64: 1, 32>}, {pipeline_mode = #tpu.pipeline_mode<synchronous>, transform_indices = @transform_3, window_bounds = array<i64: 32, 64>}, {pipeline_mode = #tpu.pipeline_mode<synchronous>, transform_indices = @transform_4, window_bounds = array<i64: 1, 64>}, {pipeline_mode = #tpu.pipeline_mode<synchronous>, transform_indices = @transform_5, window_bounds = array<i64: 64, 128>}, {pipeline_mode = #tpu.pipeline_mode<synchronous>, transform_indices = @transform_6, window_bounds = array<i64: 1, 128>}, {transform_indices = @transform_7, window_bounds = array<i64: 8, 128>}]} {
    %c0 = arith.constant 0 : index
    %c0_0 = arith.constant 0 : index
    %0 = vector.load %arg1[%c0, %c0_0] : memref<8x16xf32, #tpu.memory_space<vmem>>, vector<8x16xf32>
    %1 = arith.truncf %0 : vector<8x16xf32> to vector<8x16xbf16>
    %c0_1 = arith.constant 0 : index
    %c0_2 = arith.constant 0 : index
    %2 = vector.load %arg2[%c0_1, %c0_2] : memref<16x32xbf16, #tpu.memory_space<vmem>>, vector<16x32xbf16>
    %cst = arith.constant dense<0.000000e+00> : vector<8x32xf32>
    %3 = tpu.matmul %1, %2, %cst {dimension_numbers = #tpu.dot_dimension_numbers<[1], [0], [0], [1], [0, 0, 1, 1], [], []>} : vector<8x16xbf16>, vector<16x32xbf16>, vector<8x32xf32> -> vector<8x32xf32>
    %c0_3 = arith.constant 0 : index
    %c0_4 = arith.constant 0 : index
    %4 = vector.load %arg3[%c0_3, %c0_4] : memref<1x32xf32, #tpu.memory_space<vmem>>, vector<1x32xf32>
    %5 = vector.broadcast %4 : vector<1x32xf32> to vector<8x32xf32>
    %6 = arith.addf %3, %5 : vector<8x32xf32>
    %cst_5 = arith.constant 0.000000e+00 : f32
    %7 = vector.broadcast %cst_5 : f32 to vector<8x32xf32>
    %8 = arith.maximumf %6, %7 : vector<8x32xf32>
    %9 = arith.truncf %8 : vector<8x32xf32> to vector<8x32xbf16>
    %c0_6 = arith.constant 0 : index
    %c0_7 = arith.constant 0 : index
    %10 = vector.load %arg4[%c0_6, %c0_7] : memref<32x64xbf16, #tpu.memory_space<vmem>>, vector<32x64xbf16>
    %cst_8 = arith.constant dense<0.000000e+00> : vector<8x64xf32>
    %11 = tpu.matmul %9, %10, %cst_8 {dimension_numbers = #tpu.dot_dimension_numbers<[1], [0], [0], [1], [0, 0, 1, 1], [], []>} : vector<8x32xbf16>, vector<32x64xbf16>, vector<8x64xf32> -> vector<8x64xf32>
    %c0_9 = arith.constant 0 : index
    %c0_10 = arith.constant 0 : index
    %12 = vector.load %arg5[%c0_9, %c0_10] : memref<1x64xf32, #tpu.memory_space<vmem>>, vector<1x64xf32>
    %13 = vector.broadcast %12 : vector<1x64xf32> to vector<8x64xf32>
    %14 = arith.addf %11, %13 : vector<8x64xf32>
    %cst_11 = arith.constant 0.000000e+00 : f32
    %15 = vector.broadcast %cst_11 : f32 to vector<8x64xf32>
    %16 = arith.maximumf %14, %15 : vector<8x64xf32>
    %17 = arith.truncf %16 : vector<8x64xf32> to vector<8x64xbf16>
    %c0_12 = arith.constant 0 : index
    %c0_13 = arith.constant 0 : index
    %18 = vector.load %arg6[%c0_12, %c0_13] : memref<64x128xbf16, #tpu.memory_space<vmem>>, vector<64x128xbf16>
    %cst_14 = arith.constant dense<0.000000e+00> : vector<8x128xf32>
    %19 = tpu.matmul %17, %18, %cst_14 {dimension_numbers = #tpu.dot_dimension_numbers<[1], [0], [0], [1], [0, 0, 1, 1], [], []>} : vector<8x64xbf16>, vector<64x128xbf16>, vector<8x128xf32> -> vector<8x128xf32>
    %c0_15 = arith.constant 0 : index
    %c0_16 = arith.constant 0 : index
    %20 = vector.load %arg7[%c0_15, %c0_16] : memref<1x128xf32, #tpu.memory_space<vmem>>, vector<1x128xf32>
    %21 = vector.broadcast %20 : vector<1x128xf32> to vector<8x128xf32>
    %22 = arith.addf %19, %21 : vector<8x128xf32>
    %23 = tpu.iota {dimensions = array<i32: 1>} : vector<8x128xi32>
    %c4_i32 = arith.constant 4 : i32
    %24 = vector.broadcast %c4_i32 : i32 to vector<8x128xi32>
    %25 = arith.cmpi sge, %23, %24 : vector<8x128xi32>
    %c8_i32 = arith.constant 8 : i32
    %26 = vector.broadcast %c8_i32 : i32 to vector<8x128xi32>
    %27 = arith.cmpi slt, %23, %26 : vector<8x128xi32>
    %28 = arith.andi %25, %27 : vector<8x128xi1>
    %cst_17 = arith.constant -2.000000e+01 : f32
    %cst_18 = arith.constant 2.000000e+00 : f32
    %29 = vector.broadcast %cst_17 : f32 to vector<8x128xf32>
    %30 = arith.maximumf %29, %22 : vector<8x128xf32>
    %31 = vector.broadcast %cst_18 : f32 to vector<8x128xf32>
    %32 = arith.minimumf %31, %30 : vector<8x128xf32>
    %33 = math.exp %32 : vector<8x128xf32>
    %34 = arith.select %28, %33, %22 : vector<8x128xi1>, vector<8x128xf32>
    %c0_19 = arith.constant 0 : index
    %c0_20 = arith.constant 0 : index
    %35 = vector.load %arg8[%c0_19, %c0_20] : memref<8x128xf32, #tpu.memory_space<vmem>>, vector<8x128xf32>
    tpu.vector_store %arg8[%c0_19, %c0_20], %34 {strides = array<i32>} : memref<8x128xf32, #tpu.memory_space<vmem>>, vector<8x128xf32>,
    return
  }
  func.func @transform_0(%arg0: i32) -> (i32, i32) {
    %c0_i32 = arith.constant 0 : i32
    %c0_i32_0 = arith.constant 0 : i32
    return %arg0, %c0_i32 : i32, i32
  }
  func.func @transform_1(%arg0: i32) -> (i32, i32) {
    %c0_i32 = arith.constant 0 : i32
    %c0_i32_0 = arith.constant 0 : i32
    %c0_i32_1 = arith.constant 0 : i32
    return %c0_i32, %c0_i32_0 : i32, i32
  }
  func.func @transform_2(%arg0: i32) -> (i32, i32) {
    %c0_i32 = arith.constant 0 : i32
    %c0_i32_0 = arith.constant 0 : i32
    %c0_i32_1 = arith.constant 0 : i32
    return %c0_i32, %c0_i32_0 : i32, i32
  }
  func.func @transform_3(%arg0: i32) -> (i32, i32) {
    %c0_i32 = arith.constant 0 : i32
    %c0_i32_0 = arith.constant 0 : i32
    %c0_i32_1 = arith.constant 0 : i32
    return %c0_i32, %c0_i32_0 : i32, i32
  }
  func.func @transform_4(%arg0: i32) -> (i32, i32) {
    %c0_i32 = arith.constant 0 : i32
    %c0_i32_0 = arith.constant 0 : i32
    %c0_i32_1 = arith.constant 0 : i32
    return %c0_i32, %c0_i32_0 : i32, i32
  }
  func.func @transform_5(%arg0: i32) -> (i32, i32) {
    %c0_i32 = arith.constant 0 : i32
    %c0_i32_0 = arith.constant 0 : i32
    %c0_i32_1 = arith.constant 0 : i32
    return %c0_i32, %c0_i32_0 : i32, i32
  }
  func.func @transform_6(%arg0: i32) -> (i32, i32) {
    %c0_i32 = arith.constant 0 : i32
    %c0_i32_0 = arith.constant 0 : i32
    %c0_i32_1 = arith.constant 0 : i32
    return %c0_i32, %c0_i32_0 : i32, i32
  }
  func.func @transform_7(%arg0: i32) -> (i32, i32) {
    %c0_i32 = arith.constant 0 : i32
    %c0_i32_0 = arith.constant 0 : i32
    return %arg0, %c0_i32 : i32, i32
  }
}

</mosaic_0001>

<bundles_post_ra>
// kernel: actor_forward.1
= control target key start
LH: loop header
LB: loop body
LE: loop exit
PB: predicated region body
PF: predicated region fallthrough
CT: control target
= control target key end

     0   :  { %12 = vsyncpa [#allocation3], 0  ;;  %s588_s0 = inlined_call_operand.hbm [shape: f32[8,16], index: 0, kind: input, shape index: {}]   ;;  %s589_s1 = inlined_call_operand.hbm [shape: bf16[16,32], index: 1, kind: input, shape index: {}]   ;;  %s590_s2 = inlined_call_operand.vmem [shape: f32[1,32], index: 2, kind: input, shape index: {}]   ;;  %s591_s3 = inlined_call_operand.vmem [shape: bf16[32,64], index: 3, kind: input, shape index: {}]   ;;  %s592_s4 = inlined_call_operand.vmem [shape: f32[1,64], index: 4, kind: input, shape index: {}]   ;;  %s593_s5 = inlined_call_operand.hbm [shape: bf16[64,128], index: 5, kind: input, shape index: {}]   ;;  %s594_s6 = inlined_call_operand.hbm [shape: f32[1,128], index: 6, kind: input, shape index: {}]   ;;  %s595_s7 = inlined_call_operand.vmem [shape: f32[8,128], index: 7, kind: output, shape index: {}]  }
   0x1   :  { %13 = vsyncpa [#allocation5], 0 }
   0x2   :  { %14 = vsyncpa [#allocation8], 0  ;;  %s471_s24 = smov [#allocation4]   ;;  %s377_s28 = scalar_lea.hbm %s589_s1, 128 }
   0x3   :  { %s30_s25 = sshll.u32 %s471_s24, 4  ;;  %p378_p0 = scmp.ne.s32.totalorder %s589_s1, %s377_s28  ;;  %s31_s25 = int_to_ptr.vmem [resolvable:$true] %s30_s25 }
   0x4   :  { %p381_p1 = scmp.lt.u32.totalorder %s377_s28, %s589_s1 }
   0x6   :  { %p383_p2 = pnand %p381_p1, %p378_p0 }
   0x8   :  { %386 = shalt.err (!%p383_p2)
}
   0x9   :  { %s387_s10 = scalar_lea.vmem %s31_s25, 128  ;;  %p392_p4 = scmp.lt.s32.totalorder %s31_s25, %s31_s25 }
   0xa   :  { %p388_p3 = scmp.ne.s32.totalorder %s31_s25, %s387_s10  ;;  %p393_p5 = scmp.lt.s32.totalorder %s387_s10, %s387_s10 }
   0xc   :  { %p394_p6 = por %p393_p5, %p392_p4 }
   0xe   :  { %p395_p7 = pnand %p394_p6, %p388_p3 }
  0x10   :  { %398 = shalt.err (!%p395_p7)
}
  0x11   :  { %s472_s11 = smov 64   ;;  %s473_s12 = smov 4  }
  0x12   :  { %36 = dma.hbm_to_vmem [thread:$0]  %s589_s1, 128, %s31_s25, [#allocation5], %s472_s11, %s472_s11, %s473_s12  }
  0x13   :  { %s474_s15 = smov [#allocation2]   ;;  %s475_s17 = smov [#allocation6]  }
  0x14   :  { %s21_s16 = sshll.u32 %s474_s15, 4  ;;  %s48_s18 = sshll.u32 %s475_s17, 4  ;;  %s22_s16 = int_to_ptr.vmem [resolvable:$true] %s21_s16  ;;  %s49_s18 = int_to_ptr.vmem [resolvable:$true] %s48_s18 }
  0x15   :  { %s399_s21 = scalar_lea.hbm %s588_s0, 128 }
  0x16   :  { %p400_p8 = scmp.ne.s32.totalorder %s588_s0, %s399_s21  ;;  %p403_p9 = scmp.lt.u32.totalorder %s399_s21, %s588_s0 }
  0x18   :  { %p405_p10 = pnand %p403_p9, %p400_p8 }
  0x1a   :  { %408 = shalt.err (!%p405_p10)
}
  0x1b   :  { %s409_s1 = scalar_lea.vmem %s22_s16, 128  ;;  %p414_p12 = scmp.lt.s32.totalorder %s22_s16, %s22_s16 }
  0x1c   :  { %p410_p11 = scmp.ne.s32.totalorder %s22_s16, %s409_s1  ;;  %p415_p13 = scmp.lt.s32.totalorder %s409_s1, %s409_s1 }
  0x1e   :  { %p416_p0 = por %p415_p13, %p414_p12 }
  0x20   :  { %p417_p1 = pnand %p416_p0, %p410_p11 }
  0x22   :  { %420 = shalt.err (!%p417_p1)
}
  0x23   :  { %24 = dma.hbm_to_vmem [thread:$0]  %s588_s0, 128, %s22_s16, [#allocation3]  }
  0x24   :  { %s421_s30 = scalar_lea.hbm %s593_s5, 512 }
  0x25   :  { %p422_p2 = scmp.ne.s32.totalorder %s593_s5, %s421_s30  ;;  %p425_p3 = scmp.lt.u32.totalorder %s421_s30, %s593_s5 }
  0x27   :  { %p427_p4 = pnand %p425_p3, %p422_p2 }
  0x29   :  { %430 = shalt.err (!%p427_p4)
}
  0x2a   :  { %s431_s14 = scalar_lea.vmem %s49_s18, 512  ;;  %p436_p6 = scmp.lt.s32.totalorder %s49_s18, %s49_s18 }
  0x2b   :  { %p432_p5 = scmp.ne.s32.totalorder %s49_s18, %s431_s14  ;;  %p437_p7 = scmp.lt.s32.totalorder %s431_s14, %s431_s14 }
  0x2d   :  { %p438_p8 = por %p437_p7, %p436_p6 }
  0x2f   :  { %p439_p9 = pnand %p438_p8, %p432_p5 }
  0x31   :  { %442 = shalt.err (!%p439_p9)
}
  0x32   :  { %54 = dma.hbm_to_vmem [thread:$0]  %s593_s5, 512, %s49_s18, [#allocation5], %s472_s11, %s472_s11, %s473_s12  }
  0x33   :  { %s476_s16 = smov [#allocation7]   ;;  %s443_s21 = scalar_lea.hbm %s594_s6, 16 }
  0x34   :  { %s61_s17 = sshll.u32 %s476_s16, 4  ;;  %p444_p10 = scmp.ne.s32.totalorder %s594_s6, %s443_s21  ;;  %s62_s17 = int_to_ptr.vmem [resolvable:$true] %s61_s17 }
  0x35   :  { %p447_p11 = scmp.lt.u32.totalorder %s443_s21, %s594_s6 }
  0x37   :  { %p449_p12 = pnand %p447_p11, %p444_p10 }
  0x39   :  { %452 = shalt.err (!%p449_p12)
}
  0x3a   :  { %s453_s1 = scalar_lea.vmem %s62_s17, 16  ;;  %s457_s5 = scalar_lea.vmem %s62_s17, 32 }
  0x3b   :  { %p454_p13 = scmp.ne.s32.totalorder %s62_s17, %s453_s1  ;;  %p458_p0 = scmp.lt.s32.totalorder %s62_s17, %s62_s17 }
  0x3c   :  { %p459_p1 = scmp.lt.s32.totalorder %s457_s5, %s453_s1 }
  0x3e   :  { %p460_p2 = por %p459_p1, %p458_p0 }
  0x40   :  { %p461_p3 = pnand %p460_p2, %p454_p13 }
  0x42   :  { %464 = shalt.err (!%p461_p3)
}
  0x43   :  { %64 = dma.hbm_to_vmem [thread:$0]  %s594_s6, 16, %s62_s17, [#allocation8]  }
  0x44   :  { %465 = dma.done.wait [#allocation3], 128  }
  0x45   :  { %466 = vsyncadd [#allocation3], 4294967168 }
  0x46   :  { %467 = dma.done.wait [#allocation5], 640  }
  0x47   :  { %468 = vsyncadd [#allocation5], 4294966656 }
  0x48   :  { %469 = dma.done.wait [#allocation8], 16  }
  0x49   :  { %470 = vsyncadd [#allocation8], 4294967280  ;;  %v477_v0 = vmov 0.0   ;;  %vm478_vm0 = vmmov 0   ;;  %v368_v1 = vld [vmem:[#allocation4] sm:$0xff]   ;;  %v78_v2 = vld [vmem:[#allocation2] sm:$0xff]  ;;  %v293_v34 = vlaneseq }
  0x4a   :  { %334 = vmatprep.subr.bf16.mxu1 %v477_v0  ;;  %336 = vmatprep.mubr.msk.bf16.mxu1 %vm478_vm0, %v477_v0  ;;  %v79_v3 = vpack.c.bf16 %v78_v2, %v78_v2  ;;  %vm95_vm1 = vcmask 130048   ;;  %v369_v4 = vld [vmem:[%s591_s3] sm:$0xff]   ;;  %v370_v5 = vld [vmem:[%s591_s3 + $0x8] sm:$0xff]   ;;  %v371_v6 = vld [vmem:[#allocation6] sm:$0xff]   ;;  %vm164_vm2 = vcmask 261120   ;;  %vm249_vm3 = vcmask 523264  }
  0x4b   :  { %348 = vmatprep.subr.bf16.mxu0 %v477_v0  ;;  %356 = vmatprep.mubr.msk.bf16.mxu0 %vm478_vm0, %v477_v0  ;;  %v372_v7 = vld [vmem:[#allocation6 + $0x8] sm:$0xff]   ;;  %v311_v8 = vld [vmem:[%s590_s2] ss:$0 sm:$0xff]  ;;  %v374_v17 = vld [vmem:[#allocation6 + $0x18] sm:$0xff]   ;;  %v294_v36 = vand.u32 127, %v293_v34 }
  0x4c   :  { %335 = vmatpush3.bf16.msra.mxu1 %v368_v1  ;;  %349 = vmatpush3.bf16.msra.mxu0 %v371_v6  ;;  %v373_v16 = vld [vmem:[#allocation6 + $0x10] sm:$0xff]   ;;  %v318_v26 = vld [vmem:[#allocation7] ss:$0 sm:$0xff] }
  0x4d   :  { %340 = vmatprep.subr.bf16.mxu1 %v477_v0  ;;  %350 = vmatprep.subr.bf16.mxu0 %v477_v0  ;;  %v314_v18 = vld [vmem:[%s592_s4] ss:$0 sm:$0xff]  ;;  %vm295_vm4 = vcmp.ge.s32.totalorder %v294_v36, 4  ;;  %vm296_vm5 = vcmp.lt.s32.totalorder %v294_v36, 8 }
  0x4e   :  { %vm297_vm6 = vmand %vm295_vm4, %vm296_vm5 }
  0x4f   :  { %337 = vmatmul.mubr.msk.bf16.vlgmr.msra.gmra.mrb[0].mxu1 %vm95_vm1, %v79_v3 }
  0x50   :  { %341 = vmatpush3.bf16.msra.mxu1 %v369_v4  ;;  %344 = vmatprep.mubr.msk.bf16.mxu1 %vm478_vm0, %v477_v0 }
  0x51   :  { %342 = vmatprep.subr.bf16.mxu1 %v477_v0  ;;  %351 = vmatpush3.bf16.msra.mxu0 %v372_v7 }
  0x52   :  { %352 = vmatprep.subr.bf16.mxu0 %v477_v0 }
  0x54   :  { %343 = vmatpush3.bf16.msra.mxu1 %v370_v5 }
  0x55   :  { %353 = vmatpush3.bf16.msra.mxu0 %v373_v16 }
  0x56   :  { %354 = vmatprep.subr.bf16.mxu0 %v477_v0 }
  0x59   :  { %355 = vmatpush3.bf16.msra.mxu0 %v374_v17 }
 0x122   :  { %v133_v9 = vpop.f32.mrb[0].mxu1 }
 0x123   :  { %v134_v10 = vadd.f32 %v311_v8, %v133_v9  ;;  %v338_v11 = vpop.f32.mrb[1].mxu1 }
 0x124   :  { %v136_v12 = vpop.f32.mrb[2].mxu1 }
 0x125   :  { %v139_v13 = vmax.f32 %v134_v10, 0.0  ;;  %v339_v14 = vpop.f32.mrb[3].mxu1 }
 0x127   :  { %v140_v15 = vpack.c.bf16 %v139_v13, %v139_v13 }
 0x129   :  { %345 = vmatmul.mubr.msk.bf16.vlgmr.msra.gmra.mrb[4].mxu1 %vm164_vm2, %v140_v15 }
 0x1fc   :  { %v202_v19 = vpop.f32.mrb[4].mxu1 }
 0x1fd   :  { %v203_v20 = vadd.f32 %v314_v18, %v202_v19  ;;  %v346_v21 = vpop.f32.mrb[5].mxu1 }
 0x1fe   :  { %v205_v22 = vpop.f32.mrb[6].mxu1 }
 0x1ff   :  { %v208_v23 = vmax.f32 %v203_v20, 0.0  ;;  %v347_v24 = vpop.f32.mrb[7].mxu1 }
 0x201   :  { %v209_v25 = vpack.c.bf16 %v208_v23, %v208_v23 }
 0x203   :  { %357 = vmatmul.mubr.msk.bf16.vlgmr.msra.gmra.mrb[0].mxu0 %vm249_vm3, %v209_v25 }
 0x2d6   :  { %v287_v27 = vpop.f32.mrb[0].mxu0 }
 0x2d7   :  { %v288_v28 = vadd.f32 %v318_v26, %v287_v27  ;;  %v358_v29 = vpop.f32.mrb[1].mxu0 }
 0x2d8   :  { %v290_v30 = vpop.f32.mrb[2].mxu0 }
 0x2d9   :  { %v298_v31 = vmax.f32 %v288_v28, -20.0  ;;  %v359_v32 = vpop.f32.mrb[3].mxu0 }
 0x2db   :  { %v299_v33 = vmin.f32 %v298_v31, 2.0 }
 0x2dd   :  { %v300_v35 = vmul.f32 1.442695, %v299_v33 }
 0x2df   :  { %375 = vpow2.f32 %v300_v35 }
 0x2e9   :  { %v376_v37 = vpop.eup %375 }
 0x2ea   :  { %v302_v38 = vsel %vm297_vm6, %v376_v37, %v288_v28 }
 0x2eb   :  { %303 = vst [vmem:[%s595_s7] sm:$0xff] %v302_v38 }
 0x2ec   :  { %308 = vsyncpa [#allocation3], 1 }
 0x2ed   :  { %309 = vsyncpa [#allocation5], 1 }
 0x2ee   :  { %310 = vsyncpa [#allocation8], 1 }

</bundles_post_ra>
